<compile_context>
chip_gen: v7x
topology: tpu7x:2x2x1
jax: 0.10.0
libtpu: 0.0.40
codegen_flags: <defaults>
</compile_context>

<pallas_src>
import functools

import jax
import jax.numpy as jnp
from jax import lax
from jax.experimental import pallas as pl
from jax.experimental.pallas import tpu as pltpu


# ---------------------------------------------------------------------------
# Kernels
# ---------------------------------------------------------------------------
def _packed_norm_kernel(*refs, d, eps, fuse_add):
    """Lane-dense path: each 128-lane row holds 128//d logical rows of width d."""
    if fuse_add:
        x_ref, r_ref, seg_ref, alpha_ref, bias_ref, sum_ref, o_ref = refs
    else:
        x_ref, seg_ref, alpha_ref, bias_ref, o_ref = refs

    x = x_ref[...].astype(jnp.float32)               # (tile, 128)
    if fuse_add:
        x = x + r_ref[...].astype(jnp.float32)
        sum_ref[...] = x.astype(sum_ref.dtype)

    seg = seg_ref[...]                               # (128, 128) block-diag ones
    # Segmented per-logical-row sums via the otherwise-idle MXU; results come
    # back already broadcast across each d-lane group.  HIGHEST precision keeps
    # f32 accuracy (default TPU matmul precision would truncate to bf16).
    s = jnp.dot(x, seg, precision=lax.Precision.HIGHEST,
                preferred_element_type=jnp.float32)
    ss = jnp.dot(x * x, seg, precision=lax.Precision.HIGHEST,
                 preferred_element_type=jnp.float32)

    mean = s * jnp.float32(1.0 / d)
    # Unbiased variance (ddof=1), one-pass form; clamp tiny negatives.
    var = jnp.maximum((ss - s * mean) * jnp.float32(1.0 / max(d - 1, 1)), 0.0)
    inv = 1.0 / (jnp.sqrt(var) + jnp.float32(eps))   # exact (std + eps) semantics
    o_ref[...] = ((x - mean) * inv * alpha_ref[...] + bias_ref[...]).astype(o_ref.dtype)


def _row_norm_kernel(*refs, eps, fuse_add):
    """Lane-native path for d >= 128 (or d that does not divide 128)."""
    if fuse_add:
        x_ref, r_ref, alpha_ref, bias_ref, sum_ref, o_ref = refs
    else:
        x_ref, alpha_ref, bias_ref, o_ref = refs

    x = x_ref[...].astype(jnp.float32)               # (tile, d)
    if fuse_add:
        x = x + r_ref[...].astype(jnp.float32)
        sum_ref[...] = x.astype(sum_ref.dtype)

    d = x.shape[-1]
    s = jnp.sum(x, axis=-1, keepdims=True)
    ss = jnp.sum(x * x, axis=-1, keepdims=True)
    mean = s * jnp.float32(1.0 / d)
    var = jnp.maximum((ss - s * mean) * jnp.float32(1.0 / max(d - 1, 1)), 0.0)
    inv = 1.0 / (jnp.sqrt(var) + jnp.float32(eps))
    o_ref[...] = ((x - mean) * inv * alpha_ref[...] + bias_ref[...]).astype(o_ref.dtype)


# ---------------------------------------------------------------------------
# Tiling / chip heuristics
# ---------------------------------------------------------------------------
def _chip_defaults():
    """Generation-aware VMEM budgets and TensorCore count (safe fallbacks)."""
    kind = ""
    try:
        kind = jax.devices()[0].device_kind.lower()
    except Exception:
        pass
    if "v7" in kind:
        # 64 MiB VMEM *per TC*, 2 TCs/chip -> split the parallel axis.
        return dict(num_tc=2, budget=20 << 20, vmem_limit=48 << 20)
    if "tpu" in kind or "v5" in kind or "v6" in kind or "v4" in kind:
        # Single TC, 128 MiB VMEM: use big blocks, no forced 2-step split.
        return dict(num_tc=1, budget=48 << 20, vmem_limit=96 << 20)
    # Unknown backend (e.g. interpret mode on CPU): conservative defaults.
    return dict(num_tc=1, budget=24 << 20, vmem_limit=48 << 20)


def _choose_tile_rows(rows, width, itemsize, budget_bytes, num_tc, n_big):
    """Rows per block for a (rows, width) problem, sized by a byte budget.

    n_big = number of full-size (rows, width) arrays streamed (in + out),
    each double-buffered by the BlockSpec pipeline.
    """
    row_mult = 16 if itemsize < 4 else 8
    cap = max(row_mult, int(budget_bytes) // (2 * n_big * width * itemsize))
    # Only on multi-TC chips (v7x): prefer >= 2 grid steps so both cores work.
    if num_tc >= 2 and rows > row_mult:
        half = -(-((rows + 1) // 2) // row_mult) * row_mult
        cap = min(cap, max(row_mult, half))
    if rows <= cap:
        return rows                          # single block == full dim (always legal)
    return max(row_mult, (cap // row_mult) * row_mult)


# ---------------------------------------------------------------------------
# Wrapper
# ---------------------------------------------------------------------------
def normalizer(x, alpha, bias, eps=1e-6, residual=None):
    """Pallas implementation of Normalizer.forward.

    x: (..., d_model); alpha, bias: (d_model,).
    If `residual` is given (same shape as x), computes s = x + residual and
    returns (s, norm(s)) — the fused add+norm used between Encoder sub-layers.
    """
    orig_shape = x.shape
    d = int(orig_shape[-1])
    out_dtype = x.dtype
    fuse = residual is not None

    x2 = x.reshape(-1, d)
    r2 = residual.reshape(-1, d) if fuse else None
    rows = x2.shape[0]
    itemsize = jnp.dtype(x.dtype).itemsize

    cfg = _chip_defaults()
    n_big = 4 if fuse else 2
    compiler_params = pltpu.CompilerParams(
        dimension_semantics=("parallel",),
        vmem_limit_bytes=cfg["vmem_limit"],
    )

    alpha_f = alpha.astype(jnp.float32).reshape(1, d)
    bias_f = bias.astype(jnp.float32).reshape(1, d)

    use_packed = (d < 128) and (128 % d == 0)

    if use_packed:
        g = 128 // d
        rows_p = -(-rows // g)
        pad = rows_p * g - rows
        if pad:
            x2 = jnp.concatenate([x2, jnp.zeros((pad, d), x2.dtype)], axis=0)
            if fuse:
                r2 = jnp.concatenate([r2, jnp.zeros((pad, d), r2.dtype)], axis=0)
        xp = x2.reshape(rows_p, 128)                       # free row-major repack
        rp = r2.reshape(rows_p, 128) if fuse else None

        lane = jnp.arange(128)
        seg = (lane[:, None] // d == lane[None, :] // d).astype(jnp.float32)
        alpha_p = jnp.tile(alpha_f, (1, g))                # (1, 128), f32
        bias_p = jnp.tile(bias_f, (1, g))

        tile = _choose_tile_rows(rows_p, 128, itemsize, cfg["budget"],
                                 cfg["num_tc"], n_big)
        grid = (pl.cdiv(rows_p, tile),)

        big_spec = pl.BlockSpec((tile, 128), lambda i: (i, 0))
        const_row = pl.BlockSpec((1, 128), lambda i: (0, 0))
        seg_spec = pl.BlockSpec((128, 128), lambda i: (0, 0))

        kernel = functools.partial(_packed_norm_kernel, d=d, eps=float(eps),
                                   fuse_add=fuse)
        in_specs = ([big_spec, big_spec] if fuse else [big_spec]) + \
                   [seg_spec, const_row, const_row]
        inputs = ((xp, rp) if fuse else (xp,)) + (seg, alpha_p, bias_p)
        if fuse:
            out_shape = (jax.ShapeDtypeStruct((rows_p, 128), out_dtype),
                         jax.ShapeDtypeStruct((rows_p, 128), out_dtype))
            out_specs = (big_spec, big_spec)
        else:
            out_shape = jax.ShapeDtypeStruct((rows_p, 128), out_dtype)
            out_specs = big_spec

        out = pl.pallas_call(
            kernel,
            out_shape=out_shape,
            grid_spec=pltpu.PrefetchScalarGridSpec(
                num_scalar_prefetch=0, grid=grid,
                in_specs=in_specs, out_specs=out_specs),
            compiler_params=compiler_params,
        )(*inputs)

        def unpack(a):
            a = a.reshape(rows_p * g, d)
            if pad:
                a = a[:rows]
            return a.reshape(orig_shape)

        if fuse:
            return unpack(out[0]), unpack(out[1])
        return unpack(out)

    # --- lane-native path (d >= 128, or d not dividing 128) -----------------
    tile = _choose_tile_rows(rows, d, itemsize, cfg["budget"], cfg["num_tc"], n_big)
    grid = (pl.cdiv(rows, tile),)
    big_spec = pl.BlockSpec((tile, d), lambda i: (i, 0))
    const_row = pl.BlockSpec((1, d), lambda i: (0, 0))

    kernel = functools.partial(_row_norm_kernel, eps=float(eps), fuse_add=fuse)
    in_specs = ([big_spec, big_spec] if fuse else [big_spec]) + [const_row, const_row]
    inputs = ((x2, r2) if fuse else (x2,)) + (alpha_f, bias_f)
    if fuse:
        out_shape = (jax.ShapeDtypeStruct((rows, d), out_dtype),
                     jax.ShapeDtypeStruct((rows, d), out_dtype))
        out_specs = (big_spec, big_spec)
    else:
        out_shape = jax.ShapeDtypeStruct((rows, d), out_dtype)
        out_specs = big_spec

    out = pl.pallas_call(
        kernel,
        out_shape=out_shape,
        grid_spec=pltpu.PrefetchScalarGridSpec(
            num_scalar_prefetch=0, grid=grid,
            in_specs=in_specs, out_specs=out_specs),
        compiler_params=compiler_params,
    )(*inputs)

    if fuse:
        return out[0].reshape(orig_shape), out[1].reshape(orig_shape)
    return out.reshape(orig_shape)


# ---------------------------------------------------------------------------
# Demo / self-test
# ---------------------------------------------------------------------------
if __name__ == "__main__":
    d_model = 32                      # Encoder d_model
    batch, seq = 2, 8
    key = jax.random.PRNGKey(0)
    k1, k2, k3, k4, k5, k6 = jax.random.split(key, 6)

    # Normalizer init: alpha = ones, bias = zeros.
    alpha = jnp.ones((d_model,), jnp.float32)
    bias = jnp.zeros((d_model,), jnp.float32)

    def ref_norm(x, a, b, eps=1e-6):
        mean = jnp.mean(x, axis=-1, keepdims=True)
        std = jnp.std(x, axis=-1, keepdims=True, ddof=1)   # torch unbiased std
        return a * (x - mean) / (std + eps) + b

    # 1) Plain norm (Encoder.norm / EncoderLayer.norm_1) on (batch, seq, d_model).
    x1 = jax.random.normal(k1, (batch, seq, d_model), jnp.float32)
    out1 = normalizer(x1, alpha, bias)
    jax.block_until_ready(out1)
    assert jnp.allclose(out1, ref_norm(x1, alpha, bias), atol=1e-3, rtol=1e-3), \
        "mismatch (plain norm)"

    # 2) Fused residual-add + norm: x = x + dropout(attn(...)); x2 = norm_2(x).
    xr = jax.random.normal(k2, (batch, seq, d_model), jnp.float32)
    dl = jax.random.normal(k3, (batch, seq, d_model), jnp.float32)
    s_out, n_out = normalizer(xr, alpha, bias, residual=dl)
    jax.block_until_ready((s_out, n_out))
    assert jnp.allclose(s_out, xr + dl, atol=1e-5, rtol=1e-5), "mismatch (fused sum)"
    assert jnp.allclose(n_out, ref_norm(xr + dl, alpha, bias), atol=1e-3, rtol=1e-3), \
        "mismatch (fused norm)"

    # 3) Row count not divisible by the 128/d packing factor + non-trivial
    #    alpha/bias (exercises host pad + slice and the scale/shift path).
    a3 = jax.random.normal(k4, (d_model,), jnp.float32)
    b3 = jax.random.normal(k5, (d_model,), jnp.float32)
    x3 = jax.random.normal(k6, (3, 5, d_model), jnp.float32)
    out3 = normalizer(x3, a3, b3)
    jax.block_until_ready(out3)
    assert jnp.allclose(out3, ref_norm(x3, a3, b3), atol=1e-3, rtol=1e-3), \
        "mismatch (odd rows)"

    # TODO(synk): CNN3D conv/pool stack, bidirectional LSTM Embedder, the
    # attention/FFN matmuls and the PositionalEncoder are not implemented as
    # Pallas kernels here; only the Normalizer (and fused add+norm) is.
    print("KERNEL_OK")
</pallas_src>

<mosaic_0001>
module attributes {stable_mosaic.version = 11 : i64} {
  func.func @_packed_norm_kernel(%arg0: i32, %arg1: memref<4x128xf32, #tpu.memory_space<vmem>>, %arg2: memref<128x128xf32, #tpu.memory_space<vmem>>, %arg3: memref<1x128xf32, #tpu.memory_space<vmem>>, %arg4: memref<1x128xf32, #tpu.memory_space<vmem>>, %arg5: memref<4x128xf32, #tpu.memory_space<vmem>>) attributes {dimension_semantics = [#tpu.dimension_semantics<parallel>], iteration_bounds = array<i64: 1>, scalar_prefetch = 0 : i64, scratch_operands = 0 : i64, tpu.core_type = #tpu.core_type<tc>, window_params = [{transform_indices = @transform_0, window_bounds = array<i64: 4, 128>}, {pipeline_mode = #tpu.pipeline_mode<synchronous>, transform_indices = @transform_1, window_bounds = array<i64: 128, 128>}, {pipeline_mode = #tpu.pipeline_mode<synchronous>, transform_indices = @transform_2, window_bounds = array<i64: 1, 128>}, {pipeline_mode = #tpu.pipeline_mode<synchronous>, transform_indices = @transform_3, window_bounds = array<i64: 1, 128>}, {transform_indices = @transform_4, window_bounds = array<i64: 4, 128>}]} {
    %c0 = arith.constant 0 : index
    %c0_0 = arith.constant 0 : index
    %0 = vector.load %arg1[%c0, %c0_0] : memref<4x128xf32, #tpu.memory_space<vmem>>, vector<4x128xf32>
    %c0_1 = arith.constant 0 : index
    %c0_2 = arith.constant 0 : index
    %1 = vector.load %arg2[%c0_1, %c0_2] : memref<128x128xf32, #tpu.memory_space<vmem>>, vector<128x128xf32>
    %cst = arith.constant dense<0.000000e+00> : vector<4x128xf32>
    %2 = tpu.matmul %0, %1, %cst {dimension_numbers = #tpu.dot_dimension_numbers<[1], [0], [0], [1], [0, 0, 1, 1], [], []>, precision = #tpu.contract_precision<fp32>} : vector<4x128xf32>, vector<128x128xf32>, vector<4x128xf32> -> vector<4x128xf32>
    %3 = arith.mulf %0, %0 : vector<4x128xf32>
    %cst_3 = arith.constant dense<0.000000e+00> : vector<4x128xf32>
    %4 = tpu.matmul %3, %1, %cst_3 {dimension_numbers = #tpu.dot_dimension_numbers<[1], [0], [0], [1], [0, 0, 1, 1], [], []>, precision = #tpu.contract_precision<fp32>} : vector<4x128xf32>, vector<128x128xf32>, vector<4x128xf32> -> vector<4x128xf32>
    %cst_4 = arith.constant 3.125000e-02 : f32
    %5 = vector.broadcast %cst_4 : f32 to vector<4x128xf32>
    %6 = arith.mulf %2, %5 : vector<4x128xf32>
    %7 = arith.mulf %2, %6 : vector<4x128xf32>
    %8 = arith.subf %4, %7 : vector<4x128xf32>
    %cst_5 = arith.constant 0.0322580636 : f32
    %9 = vector.broadcast %cst_5 : f32 to vector<4x128xf32>
    %10 = arith.mulf %8, %9 : vector<4x128xf32>
    %cst_6 = arith.constant 0.000000e+00 : f32
    %11 = vector.broadcast %cst_6 : f32 to vector<4x128xf32>
    %12 = arith.maximumf %10, %11 : vector<4x128xf32>
    %13 = math.sqrt %12 : vector<4x128xf32>
    %cst_7 = arith.constant 9.99999997E-7 : f32
    %14 = vector.broadcast %cst_7 : f32 to vector<4x128xf32>
    %15 = arith.addf %13, %14 : vector<4x128xf32>
    %cst_8 = arith.constant 1.000000e+00 : f32
    %16 = vector.broadcast %cst_8 : f32 to vector<4x128xf32>
    %17 = arith.divf %16, %15 : vector<4x128xf32>
    %18 = arith.subf %0, %6 : vector<4x128xf32>
    %19 = arith.mulf %18, %17 : vector<4x128xf32>
    %c0_9 = arith.constant 0 : index
    %c0_10 = arith.constant 0 : index
    %20 = vector.load %arg3[%c0_9, %c0_10] : memref<1x128xf32, #tpu.memory_space<vmem>>, vector<1x128xf32>
    %21 = vector.broadcast %20 : vector<1x128xf32> to vector<4x128xf32>
    %22 = arith.mulf %19, %21 : vector<4x128xf32>
    %c0_11 = arith.constant 0 : index
    %c0_12 = arith.constant 0 : index
    %23 = vector.load %arg4[%c0_11, %c0_12] : memref<1x128xf32, #tpu.memory_space<vmem>>, vector<1x128xf32>
    %24 = vector.broadcast %23 : vector<1x128xf32> to vector<4x128xf32>
    %25 = arith.addf %22, %24 : vector<4x128xf32>
    %c0_13 = arith.constant 0 : index
    %c0_14 = arith.constant 0 : index
    %26 = vector.load %arg5[%c0_13, %c0_14] : memref<4x128xf32, #tpu.memory_space<vmem>>, vector<4x128xf32>
    tpu.vector_store %arg5[%c0_13, %c0_14], %25 {strides = array<i32>} : memref<4x128xf32, #tpu.memory_space<vmem>>, vector<4x128xf32>,
    return
  }
  func.func @transform_0(%arg0: i32) -> (i32, i32) {
    %c0_i32 = arith.constant 0 : i32
    %c0_i32_0 = arith.constant 0 : i32
    return %arg0, %c0_i32 : i32, i32
  }
  func.func @transform_1(%arg0: i32) -> (i32, i32) {
    %c0_i32 = arith.constant 0 : i32
    %c0_i32_0 = arith.constant 0 : i32
    %c0_i32_1 = arith.constant 0 : i32
    return %c0_i32, %c0_i32_0 : i32, i32
  }
  func.func @transform_2(%arg0: i32) -> (i32, i32) {
    %c0_i32 = arith.constant 0 : i32
    %c0_i32_0 = arith.constant 0 : i32
    %c0_i32_1 = arith.constant 0 : i32
    return %c0_i32, %c0_i32_0 : i32, i32
  }
  func.func @transform_3(%arg0: i32) -> (i32, i32) {
    %c0_i32 = arith.constant 0 : i32
    %c0_i32_0 = arith.constant 0 : i32
    %c0_i32_1 = arith.constant 0 : i32
    return %c0_i32, %c0_i32_0 : i32, i32
  }
  func.func @transform_4(%arg0: i32) -> (i32, i32) {
    %c0_i32 = arith.constant 0 : i32
    %c0_i32_0 = arith.constant 0 : i32
    return %arg0, %c0_i32 : i32, i32
  }
}

</mosaic_0001>

<bundles_post_ra>
// kernel: tpu_custom_call.1
= control target key start
LH: loop header
LB: loop body
LE: loop exit
PB: predicated region body
PF: predicated region fallthrough
CT: control target
= control target key end

     0   :  { %9 = vsyncpa [#allocation3], 0  ;;  %s2854_s0 = inlined_call_operand.hbm [shape: f32[4,128], index: 0, kind: input, shape index: {}]   ;;  %s2855_s1 = inlined_call_operand.hbm [shape: f32[128,128], index: 1, kind: input, shape index: {}]   ;;  %s2856_s2 = inlined_call_operand.vmem [shape: f32[1,128], index: 2, kind: input, shape index: {}]   ;;  %s2857_s3 = inlined_call_operand.vmem [shape: f32[1,128], index: 3, kind: input, shape index: {}]   ;;  %s2858_s4 = inlined_call_operand.hbm [shape: f32[4,128], index: 4, kind: output, shape index: {}]  }
   0x1   :  { %10 = vsyncpa [#allocation6], 0 }
   0x2   :  { %11 = vsyncpa [#allocation4], 0  ;;  %s2412_s15 = smov [#allocation2]   ;;  %s2413_s17 = smov [#allocation5]  }
   0x3   :  { %s18_s16 = sshll.u32 %s2412_s15, 4  ;;  %s27_s18 = sshll.u32 %s2413_s17, 4  ;;  %s19_s16 = int_to_ptr.vmem [resolvable:$true] %s18_s16  ;;  %s2445_s18 = int_to_ptr.vmem [resolvable:$true] %s27_s18 }
   0x4   :  { %s2340_s21 = scalar_lea.hbm %s2854_s0, 64 }
   0x5   :  { %p2341_p0 = scmp.ne.s32.totalorder %s2854_s0, %s2340_s21  ;;  %p2344_p1 = scmp.lt.u32.totalorder %s2340_s21, %s2854_s0 }
   0x7   :  { %p2346_p2 = pnand %p2344_p1, %p2341_p0 }
   0x9   :  { %2349 = shalt.err (!%p2346_p2)
}
   0xa   :  { %s2350_s26 = scalar_lea.vmem %s19_s16, 64  ;;  %p2355_p4 = scmp.lt.s32.totalorder %s19_s16, %s19_s16 }
   0xb   :  { %p2351_p3 = scmp.ne.s32.totalorder %s19_s16, %s2350_s26  ;;  %p2356_p5 = scmp.lt.s32.totalorder %s2350_s26, %s2350_s26 }
   0xd   :  { %p2357_p6 = por %p2356_p5, %p2355_p4 }
   0xf   :  { %p2358_p7 = pnand %p2357_p6, %p2351_p3 }
  0x11   :  { %2361 = shalt.err (!%p2358_p7)
}
  0x12   :  { %21 = dma.hbm_to_vmem [thread:$0]  %s2854_s0, 64, %s19_s16, [#allocation3]  }
  0x13   :  { %s2362_s5 = scalar_lea.hbm %s2855_s1, 2048 }
  0x14   :  { %p2363_p8 = scmp.ne.s32.totalorder %s2855_s1, %s2362_s5  ;;  %p2366_p9 = scmp.lt.u32.totalorder %s2362_s5, %s2855_s1 }
  0x16   :  { %p2368_p10 = pnand %p2366_p9, %p2363_p8 }
  0x18   :  { %2371 = shalt.err (!%p2368_p10)
}
  0x19   :  { %s2372_s10 = scalar_lea.vmem %s2445_s18, 2048  ;;  %p2377_p12 = scmp.lt.s32.totalorder %s2445_s18, %s2445_s18 }
  0x1a   :  { %p2373_p11 = scmp.ne.s32.totalorder %s2445_s18, %s2372_s10  ;;  %p2378_p13 = scmp.lt.s32.totalorder %s2372_s10, %s2372_s10 }
  0x1c   :  { %p2379_p0 = por %p2378_p13, %p2377_p12 }
  0x1e   :  { %p2380_p1 = pnand %p2379_p0, %p2373_p11 }
  0x20   :  { %2383 = shalt.err (!%p2380_p1)
}
  0x21   :  { %s2414_s0 = smov 128   ;;  %s2415_s11 = smov 8  }
  0x22   :  { %33 = dma.hbm_to_vmem [thread:$0]  %s2855_s1, 2048, %s2445_s18, [#allocation6], %s2414_s0, %s2414_s0, %s2415_s11  }
  0x23   :  { %2406 = dma.done.wait [#allocation3], 64  }
  0x24   :  { %2407 = vsyncadd [#allocation3], 4294967232 }
  0x25   :  { %2408 = dma.done.wait [#allocation6], 2048  }
  0x26   :  { %2409 = vsyncadd [#allocation6], 4294965248  ;;  %v2416_v0 = vmov 0.0|0.0   ;;  %vm2417_vm0 = vmmov 0   ;;  %v2418_v1 = vmov 0.0   ;;  %v45_v2 = vld [vmem:[#allocation5] sm:$0xff] }
  0x27   :  { %2020 = vmatprep.subr.bf16.mxu0 %v2416_v0  ;;  %2164 = vmatprep.subr.bf16.mxu1 %v2416_v0  ;;  %v46_v3 = vld [vmem:[#allocation5 + $0x8] sm:$0xff]  ;;  %v47_v4 = vld [vmem:[#allocation5 + $0x10] sm:$0xff]  ;;  %v62_v5 = vand.u32 4294901760, %v45_v2  ;;  %v48_v7 = vld [vmem:[#allocation5 + $0x18] sm:$0xff]  ;;  %s2419_s17 = smov [#allocation7]  }
  0x28   :  { %1632 = vmatprep.mubr.msk.f32.mxu0 %vm2417_vm0, %v2418_v1  ;;  %1842 = vmatprep.mubr.msk.f32.mxu1 %vm2417_vm0, %v2418_v1  ;;  %v65_v6 = vand.u32 4294901760, %v46_v3  ;;  %v68_v8 = vand.u32 4294901760, %v47_v4  ;;  %v71_v9 = vand.u32 4294901760, %v48_v7  ;;  %v2482_v10 = vld [vmem:[#allocation5 + $0x20] sm:$0xff]  ;;  %v2484_v11 = vld [vmem:[#allocation5 + $0x28] sm:$0xff]  ;;  %v2496_v16 = vld [vmem:[#allocation5 + $0x30] sm:$0xff] }
  0x29   :  { %v74_v14 = vand.u32 4294901760, %v2482_v10  ;;  %v77_v15 = vand.u32 4294901760, %v2484_v11  ;;  %v2498_v17 = vld [vmem:[#allocation5 + $0x38] sm:$0xff]  ;;  %v80_v20 = vand.u32 4294901760, %v2496_v16  ;;  %v53_v22 = vld [vmem:[#allocation5 + $0x40] sm:$0xff]  ;;  %v54_v23 = vld [vmem:[#allocation5 + $0x48] sm:$0xff]  ;;  %v2519_v35 = vsub.f32 %v45_v2, %v62_v5 }
  0x2a   :  { %v2486_v12 = vpack.c.bf16 %v65_v6, %v62_v5  ;;  %v2490_v13 = vpack.c.bf16 %v71_v9, %v68_v8  ;;  %v2500_v18 = vld [vmem:[#allocation2] sm:$0xf]  ;;  %v83_v21 = vand.u32 4294901760, %v2498_v17  ;;  %v55_v26 = vld [vmem:[#allocation5 + $0x50] sm:$0xff]  ;;  %v57_v28 = vld [vmem:[#allocation5 + $0x60] sm:$0xff]  ;;  %v86_v30 = vand.u32 4294901760, %v53_v22 }
  0x2b   :  { %v2504_v19 = vpack.c.bf16 %v77_v15, %v74_v14  ;;  %v2511_v24 = vand.u32 4294901760, %v2500_v18  ;;  %v702_v25 = vmul.f32 %v2500_v18, %v2500_v18  ;;  %v56_v27 = vld [vmem:[#allocation5 + $0x58] sm:$0xff]  ;;  %v89_v31 = vand.u32 4294901760, %v54_v23  ;;  %v58_v32 = vld [vmem:[#allocation5 + $0x68] sm:$0xff]  ;;  %v59_v33 = vld [vmem:[#allocation5 + $0x70] sm:$0xff]  ;;  %s1384_s18 = sshll.u32 %s2419_s17, 4  ;;  %s1385_s18 = int_to_ptr.vmem [resolvable:$true] %s1384_s18 }
  0x2c   :  { %2022 = vmatpush3.bf16.msra.mxu0 %v2486_v12  ;;  %2166 = vmatpush3.bf16.msra.mxu1 %v2486_v12  ;;  %v2517_v29 = vpack.c.bf16 %v83_v21, %v80_v20  ;;  %v60_v34 = vld [vmem:[#allocation5 + $0x78] sm:$0xff]  ;;  %v2527_v37 = vsub.f32 %v46_v3, %v65_v6  ;;  %v2529_v38 = vsub.f32 %v47_v4, %v68_v8  ;;  %v92_v39 = vand.u32 4294901760, %v55_v26  ;;  %s2384_s19 = scalar_lea.vmem %s1385_s18, 64  ;;  %p2389_p3 = scmp.lt.s32.totalorder %s1385_s18, %s1385_s18 }
  0x2d   :  { %2023 = vmatprep.subr.bf16.mxu0 %v2416_v0  ;;  %2167 = vmatprep.subr.bf16.mxu1 %v2416_v0  ;;  %v2525_v36 = vsub.f32 %v2500_v18, %v2511_v24  ;;  %v95_v40 = vand.u32 4294901760, %v56_v27  ;;  %v2531_v41 = vand.u32 4294901760, %v702_v25  ;;  %v98_v42 = vand.u32 4294901760, %v57_v28  ;;  %p2385_p2 = scmp.ne.s32.totalorder %s1385_s18, %s2384_s19  ;;  %p2390_p4 = scmp.lt.s32.totalorder %s2384_s19, %s2384_s19 }
  0x2e   :  { %v101_v43 = vand.u32 4294901760, %v58_v32  ;;  %v104_v44 = vand.u32 4294901760, %v59_v33  ;;  %v107_v45 = vand.u32 4294901760, %v60_v34  ;;  %v2535_v46 = vpack.c.bf16 %v89_v31, %v86_v30 }
  0x2f   :  { %v155_v47 = vand.u32 4294901760, %v2519_v35  ;;  %v2860_v48 = vand.u32 4294901760, %v2525_v36  ;;  %v162_v49 = vand.u32 4294901760, %v2527_v37  ;;  %v169_v50 = vand.u32 4294901760, %v2529_v38  ;;  %p2391_p5 = por %p2390_p4, %p2389_p3 }
  0x30   :  { %2025 = vmatpush3.bf16.msra.mxu0 %v2490_v13  ;;  %2169 = vmatpush3.bf16.msra.mxu1 %v2490_v13  ;;  %v2543_v51 = vsub.f32 %v48_v7, %v71_v9  ;;  %v2546_v52 = vsub.f32 %v702_v25, %v2531_v41  ;;  %v2548_v53 = vpack.c.bf16 %v95_v40, %v92_v39 }
  0x31   :  { %2026 = vmatprep.subr.bf16.mxu0 %v2416_v0  ;;  %2170 = vmatprep.subr.bf16.mxu1 %v2416_v0  ;;  %v2550_v54 = vpack.c.bf16 %v101_v43, %v98_v42  ;;  %v2552_v55 = vpack.c.bf16 %v107_v45, %v104_v44  ;;  %v156_v56 = vsub.f32 %v2519_v35, %v155_v47  ;;  %p2392_p6 = pnand %p2391_p5, %p2385_p2 }
  0x32   :  { %v2558_v57 = vsub.f32 %v2482_v10, %v74_v14  ;;  %v2561_v58 = vsub.f32 %v2484_v11, %v77_v15  ;;  %v145_v59 = vsub.f32 %v2525_v36, %v2860_v48  ;;  %v163_v60 = vsub.f32 %v2527_v37, %v162_v49 }
  0x33   :  { %v2570_v61 = vsub.f32 %v2529_v38, %v169_v50  ;;  %v176_v62 = vand.u32 4294901760, %v2543_v51  ;;  %v2859_v63 = vand.u32 4294901760, %v2546_v52  ;;  %v2575_v2 = vsub.f32 %v2496_v16, %v80_v20 }
  0x34   :  { %2028 = vmatpush3.bf16.msra.mxu0 %v2504_v19  ;;  %2172 = vmatpush3.bf16.msra.mxu1 %v2504_v19  ;;  %v2578_v3 = vsub.f32 %v2498_v17, %v83_v21  ;;  %v2580_v4 = vsub.f32 %v53_v22, %v86_v30  ;;  %v2582_v5 = vsub.f32 %v54_v23, %v89_v31  ;;  %v183_v9 = vand.u32 4294901760, %v2558_v57 }
  0x35   :  { %2029 = vmatprep.subr.bf16.mxu0 %v2416_v0  ;;  %2173 = vmatprep.subr.bf16.mxu1 %v2416_v0  ;;  %v2584_v6 = vsub.f32 %v55_v26, %v92_v39  ;;  %v2586_v7 = vsub.f32 %v56_v27, %v95_v40  ;;  %v2588_v8 = vsub.f32 %v57_v28, %v98_v42  ;;  %v157_v15 = vand.u32 4294901760, %v156_v56 }
  0x36   :  { %v2593_v10 = vsub.f32 %v58_v32, %v101_v43  ;;  %v2595_v11 = vsub.f32 %v59_v33, %v104_v44  ;;  %v2597_v14 = vsub.f32 %v60_v34, %v107_v45  ;;  %v164_v16 = vand.u32 4294901760, %v163_v60 }
  0x37   :  { %v177_v17 = vsub.f32 %v2543_v51, %v176_v62  ;;  %v190_v20 = vand.u32 4294901760, %v2561_v58  ;;  %v787_v21 = vsub.f32 %v2546_v52, %v2859_v63  ;;  %v197_v22 = vand.u32 4294901760, %v2575_v2 }
  0x38   :  { %2031 = vmatpush3.bf16.msra.mxu0 %v2517_v29  ;;  %2175 = vmatpush3.bf16.msra.mxu1 %v2517_v29  ;;  %v204_v23 = vand.u32 4294901760, %v2578_v3  ;;  %v211_v25 = vand.u32 4294901760, %v2580_v4  ;;  %v218_v26 = vand.u32 4294901760, %v2582_v5  ;;  %v225_v27 = vand.u32 4294901760, %v2584_v6 }
  0x39   :  { %2032 = vmatprep.subr.bf16.mxu0 %v2416_v0  ;;  %2176 = vmatprep.subr.bf16.mxu1 %v2416_v0  ;;  %v232_v28 = vand.u32 4294901760, %v2586_v7  ;;  %v239_v30 = vand.u32 4294901760, %v2588_v8  ;;  %v246_v31 = vand.u32 4294901760, %v2593_v10  ;;  %v253_v32 = vand.u32 4294901760, %v2595_v11 }
  0x3a   :  { %v2861_v33 = vand.u32 4294901760, %v2597_v14  ;;  %v2618_v34 = vpack.c.bf16 %v162_v49, %v155_v47  ;;  %v2622_v39 = vpack.c.bf16 %v176_v62, %v169_v50  ;;  %v2624_v40 = vpack.c.bf16 %v190_v20, %v183_v9 }
  0x3b   :  { %v2626_v42 = vpack.c.bf16 %v204_v23, %v197_v22  ;;  %v2628_v43 = vpack.c.bf16 %v218_v26, %v211_v25  ;;  %v2630_v44 = vpack.c.bf16 %v232_v28, %v225_v27  ;;  %v2632_v45 = vpack.c.bf16 %v246_v31, %v239_v30 }
  0x3c   :  { %2034 = vmatpush3.bf16.msra.mxu0 %v2535_v46  ;;  %2178 = vmatpush3.bf16.msra.mxu1 %v2535_v46  ;;  %v2638_v47 = vpack.c.bf16 %v2861_v33, %v253_v32  ;;  %v146_v49 = vand.u32 4294901760, %v145_v59  ;;  %v788_v56 = vand.u32 4294901760, %v787_v21  ;;  %v184_v50 = vsub.f32 %v2558_v57, %v183_v9 }
  0x3d   :  { %2035 = vmatprep.subr.bf16.mxu0 %v2416_v0  ;;  %2179 = vmatprep.subr.bf16.mxu1 %v2416_v0  ;;  %v191_v60 = vsub.f32 %v2561_v58, %v190_v20  ;;  %v2045_v62 = vpack.c.bf16 %v164_v16, %v157_v15  ;;  %v171_v63 = vand.u32 4294901760, %v2570_v61  ;;  %v178_v48 = vand.u32 4294901760, %v177_v17 }
  0x3e   :  { %v185_v59 = vand.u32 4294901760, %v184_v50  ;;  %v198_v20 = vsub.f32 %v2575_v2, %v197_v22  ;;  %v205_v33 = vsub.f32 %v2578_v3, %v204_v23  ;;  %v226_v17 = vsub.f32 %v2584_v6, %v225_v27 }
  0x3f   :  { %v192_v21 = vand.u32 4294901760, %v191_v60  ;;  %v2048_v9 = vpack.c.bf16 %v178_v48, %v171_v63  ;;  %v212_v48 = vsub.f32 %v2580_v4, %v211_v25  ;;  %v219_v63 = vsub.f32 %v2582_v5, %v218_v26 }
  0x40   :  { %2037 = vmatpush3.bf16.msra.mxu0 %v2548_v53  ;;  %2181 = vmatpush3.bf16.msra.mxu1 %v2548_v53  ;;  %v199_v15 = vand.u32 4294901760, %v198_v20  ;;  %v206_v16 = vand.u32 4294901760, %v205_v33  ;;  %v240_v25 = vsub.f32 %v2588_v8, %v239_v30  ;;  %v227_v33 = vand.u32 4294901760, %v226_v17 }
  0x41   :  { %2038 = vmatprep.subr.bf16.mxu0 %v2416_v0  ;;  %2182 = vmatprep.subr.bf16.mxu1 %v2416_v0  ;;  %v2051_v61 = vpack.c.bf16 %v192_v21, %v185_v59  ;;  %v213_v23 = vand.u32 4294901760, %v212_v48  ;;  %v247_v27 = vsub.f32 %v2593_v10, %v246_v31  ;;  %v254_v30 = vsub.f32 %v2595_v11, %v253_v32 }
  0x42   :  { %v2054_v22 = vpack.c.bf16 %v206_v16, %v199_v15  ;;  %v241_v60 = vand.u32 4294901760, %v240_v25  ;;  %v2862_v59 = vand.u32 4294901760, %v2597_v14  ;;  %v2072_v15 = vpack.c.bf16 %v2543_v51, %v2529_v38 }
  0x43   :  { %v2081_v38 = vpack.c.bf16 %v2582_v5, %v2580_v4  ;;  %v2084_v51 = vpack.c.bf16 %v2586_v7, %v2584_v6 }
  0x44   :  { %2040 = vmatpush3.bf16.msra.mxu0 %v2550_v54  ;;  %2184 = vmatpush3.bf16.msra.mxu1 %v2550_v54  ;;  %v261_v21 = vsub.f32 %v2597_v14, %v2862_v59 }
  0x45   :  { %2041 = vmatprep.subr.bf16.mxu0 %v2416_v0  ;;  %2185 = vmatprep.subr.bf16.mxu1 %v2416_v0 }
  0x46   :  { %v262_v20 = vand.u32 4294901760, %v261_v21 }
  0x48   :  { %2043 = vmatpush3.bf16.msra.mxu0 %v2552_v55  ;;  %2187 = vmatpush3.bf16.msra.mxu1 %v2552_v55 }
  0x49   :  { %2044 = vmatprep.subr.bf16.mxu0 %v2416_v0  ;;  %2188 = vmatprep.subr.bf16.mxu1 %v2416_v0 }
  0x4b   :  { %1633 = vmatmul.mubr.f32.vlgmr.msra.gmra.mrb[0].mxu0 %v146_v49  ;;  %1843 = vmatmul.mubr.f32.vlgmr.msra.gmra.mrb[0].mxu1 %v788_v56  ;;  %v220_v49 = vand.u32 4294901760, %v219_v63  ;;  %v233_v56 = vsub.f32 %v2586_v7, %v232_v28  ;;  %v1394_v7 = vld [vmem:[%s2856_s2] ss:$0 sm:$0xff] }
  0x4c   :  { %2046 = vmatpush3.bf16.msra.mxu0 %v2045_v62  ;;  %2190 = vmatpush3.bf16.msra.mxu1 %v2045_v62  ;;  %v248_v62 = vand.u32 4294901760, %v247_v27 }
  0x4d   :  { %2047 = vmatprep.subr.bf16.mxu0 %v2416_v0  ;;  %2191 = vmatprep.subr.bf16.mxu1 %v2416_v0  ;;  %v2057_v26 = vpack.c.bf16 %v220_v49, %v213_v23  ;;  %v234_v50 = vand.u32 4294901760, %v233_v56 }
  0x4e   :  { %1667 = vmatprep.mubr.msk.f32.mxu0 %vm2417_vm0, %v2418_v1  ;;  %1877 = vmatprep.mubr.msk.f32.mxu1 %vm2417_vm0, %v2418_v1  ;;  %v2063_v31 = vpack.c.bf16 %v248_v62, %v241_v60 }
  0x4f   :  { %v2060_v28 = vpack.c.bf16 %v234_v50, %v227_v33 }
  0x50   :  { %2049 = vmatpush3.bf16.msra.mxu0 %v2048_v9  ;;  %2193 = vmatpush3.bf16.msra.mxu1 %v2048_v9  ;;  %v255_v9 = vand.u32 4294901760, %v254_v30 }
  0x51   :  { %2050 = vmatprep.subr.bf16.mxu0 %v2416_v0  ;;  %2194 = vmatprep.subr.bf16.mxu1 %v2416_v0 }
  0x52   :  { %v2066_v32 = vpack.c.bf16 %v262_v20, %v255_v9 }
  0x54   :  { %2052 = vmatpush3.bf16.msra.mxu0 %v2051_v61  ;;  %2196 = vmatpush3.bf16.msra.mxu1 %v2051_v61  ;;  %v2069_v61 = vpack.c.bf16 %v2527_v37, %v2519_v35  ;;  %v2075_v35 = vpack.c.bf16 %v2561_v58, %v2558_v57  ;;  %v2078_v37 = vpack.c.bf16 %v2578_v3, %v2575_v2  ;;  %v2863_v2 = vand.u32 4294901760, %v2525_v36 }
  0x55   :  { %2053 = vmatprep.subr.bf16.mxu0 %v2416_v0  ;;  %2197 = vmatprep.subr.bf16.mxu1 %v2416_v0  ;;  %v2087_v57 = vpack.c.bf16 %v2593_v10, %v2588_v8  ;;  %v2090_v58 = vpack.c.bf16 %v2597_v14, %v2595_v11  ;;  %v2864_v3 = vand.u32 4294901760, %v2546_v52  ;;  %v1395_v10 = vld [vmem:[%s2857_s3] ss:$0 sm:$0xff] }
  0x58   :  { %2055 = vmatpush3.bf16.msra.mxu0 %v2054_v22  ;;  %2199 = vmatpush3.bf16.msra.mxu1 %v2054_v22 }
  0x59   :  { %2056 = vmatprep.subr.bf16.mxu0 %v2416_v0  ;;  %2200 = vmatprep.subr.bf16.mxu1 %v2416_v0 }
  0x5c   :  { %2058 = vmatpush3.bf16.msra.mxu0 %v2057_v26  ;;  %2202 = vmatpush3.bf16.msra.mxu1 %v2057_v26 }
  0x5d   :  { %2059 = vmatprep.subr.bf16.mxu0 %v2416_v0  ;;  %2203 = vmatprep.subr.bf16.mxu1 %v2416_v0 }
  0x60   :  { %2061 = vmatpush3.bf16.msra.mxu0 %v2060_v28  ;;  %2205 = vmatpush3.bf16.msra.mxu1 %v2060_v28 }
  0x61   :  { %2062 = vmatprep.subr.bf16.mxu0 %v2416_v0  ;;  %2206 = vmatprep.subr.bf16.mxu1 %v2416_v0 }
  0x64   :  { %2064 = vmatpush3.bf16.msra.mxu0 %v2063_v31  ;;  %2208 = vmatpush3.bf16.msra.mxu1 %v2063_v31 }
  0x65   :  { %2065 = vmatprep.subr.bf16.mxu0 %v2416_v0  ;;  %2209 = vmatprep.subr.bf16.mxu1 %v2416_v0 }
  0x68   :  { %2067 = vmatpush3.bf16.msra.mxu0 %v2066_v32  ;;  %2211 = vmatpush3.bf16.msra.mxu1 %v2066_v32 }
  0x69   :  { %2068 = vmatprep.subr.bf16.mxu0 %v2416_v0  ;;  %2212 = vmatprep.subr.bf16.mxu1 %v2416_v0 }
  0x6b   :  { %1668 = vmatmul.mubr.f32.vlgmr.msra.gmra.mrb[0].mxu0 %v2511_v24  ;;  %1878 = vmatmul.mubr.f32.vlgmr.msra.gmra.mrb[0].mxu1 %v2531_v41 }
  0x6c   :  { %2070 = vmatpush3.bf16.msra.mxu0 %v2069_v61  ;;  %2214 = vmatpush3.bf16.msra.mxu1 %v2069_v61 }
  0x6d   :  { %2071 = vmatprep.subr.bf16.mxu0 %v2416_v0  ;;  %2215 = vmatprep.subr.bf16.mxu1 %v2416_v0 }
  0x6e   :  { %1702 = vmatprep.mubr.msk.f32.mxu0 %vm2417_vm0, %v2418_v1  ;;  %1912 = vmatprep.mubr.msk.f32.mxu1 %vm2417_vm0, %v2418_v1 }
  0x70   :  { %2073 = vmatpush3.bf16.msra.mxu0 %v2072_v15  ;;  %2217 = vmatpush3.bf16.msra.mxu1 %v2072_v15 }
  0x71   :  { %2074 = vmatprep.subr.bf16.mxu0 %v2416_v0  ;;  %2218 = vmatprep.subr.bf16.mxu1 %v2416_v0 }
  0x74   :  { %2076 = vmatpush3.bf16.msra.mxu0 %v2075_v35  ;;  %2220 = vmatpush3.bf16.msra.mxu1 %v2075_v35 }
  0x75   :  { %2077 = vmatprep.subr.bf16.mxu0 %v2416_v0  ;;  %2221 = vmatprep.subr.bf16.mxu1 %v2416_v0 }
  0x78   :  { %2079 = vmatpush3.bf16.msra.mxu0 %v2078_v37  ;;  %2223 = vmatpush3.bf16.msra.mxu1 %v2078_v37 }
  0x79   :  { %2080 = vmatprep.subr.bf16.mxu0 %v2416_v0  ;;  %2224 = vmatprep.subr.bf16.mxu1 %v2416_v0 }
  0x7c   :  { %2082 = vmatpush3.bf16.msra.mxu0 %v2081_v38  ;;  %2226 = vmatpush3.bf16.msra.mxu1 %v2081_v38 }
  0x7d   :  { %2083 = vmatprep.subr.bf16.mxu0 %v2416_v0  ;;  %2227 = vmatprep.subr.bf16.mxu1 %v2416_v0 }
  0x80   :  { %2085 = vmatpush3.bf16.msra.mxu0 %v2084_v51  ;;  %2229 = vmatpush3.bf16.msra.mxu1 %v2084_v51 }
  0x81   :  { %2086 = vmatprep.subr.bf16.mxu0 %v2416_v0  ;;  %2230 = vmatprep.subr.bf16.mxu1 %v2416_v0 }
  0x84   :  { %2088 = vmatpush3.bf16.msra.mxu0 %v2087_v57  ;;  %2232 = vmatpush3.bf16.msra.mxu1 %v2087_v57 }
  0x85   :  { %2089 = vmatprep.subr.bf16.mxu0 %v2416_v0  ;;  %2233 = vmatprep.subr.bf16.mxu1 %v2416_v0 }
  0x88   :  { %2091 = vmatpush3.bf16.msra.mxu0 %v2090_v58  ;;  %2235 = vmatpush3.bf16.msra.mxu1 %v2090_v58 }
  0x89   :  { %2092 = vmatprep.subr.bf16.mxu0 %v2416_v0  ;;  %2236 = vmatprep.subr.bf16.mxu1 %v2416_v0 }
  0x8b   :  { %1703 = vmatmul.mubr.f32.vlgmr.msra.gmra.mrb[0].mxu0 %v2525_v36  ;;  %1913 = vmatmul.mubr.f32.vlgmr.msra.gmra.mrb[0].mxu1 %v2546_v52 }
  0x8c   :  { %2094 = vmatpush3.bf16.msra.mxu0 %v2486_v12  ;;  %2238 = vmatpush3.bf16.msra.mxu1 %v2486_v12 }
  0x8d   :  { %2095 = vmatprep.subr.bf16.mxu0 %v2416_v0  ;;  %2239 = vmatprep.subr.bf16.mxu1 %v2416_v0 }
  0x8e   :  { %1737 = vmatprep.mubr.msk.f32.mxu0 %vm2417_vm0, %v2418_v1  ;;  %1947 = vmatprep.mubr.msk.f32.mxu1 %vm2417_vm0, %v2418_v1 }
  0x90   :  { %2097 = vmatpush3.bf16.msra.mxu0 %v2490_v13  ;;  %2241 = vmatpush3.bf16.msra.mxu1 %v2490_v13 }
  0x91   :  { %2098 = vmatprep.subr.bf16.mxu0 %v2416_v0  ;;  %2242 = vmatprep.subr.bf16.mxu1 %v2416_v0 }
  0x94   :  { %2100 = vmatpush3.bf16.msra.mxu0 %v2504_v19  ;;  %2244 = vmatpush3.bf16.msra.mxu1 %v2504_v19 }
  0x95   :  { %2101 = vmatprep.subr.bf16.mxu0 %v2416_v0  ;;  %2245 = vmatprep.subr.bf16.mxu1 %v2416_v0 }
  0x98   :  { %2103 = vmatpush3.bf16.msra.mxu0 %v2517_v29  ;;  %2247 = vmatpush3.bf16.msra.mxu1 %v2517_v29 }
  0x99   :  { %2104 = vmatprep.subr.bf16.mxu0 %v2416_v0  ;;  %2248 = vmatprep.subr.bf16.mxu1 %v2416_v0 }
  0x9c   :  { %2106 = vmatpush3.bf16.msra.mxu0 %v2535_v46  ;;  %2250 = vmatpush3.bf16.msra.mxu1 %v2535_v46 }
  0x9d   :  { %2107 = vmatprep.subr.bf16.mxu0 %v2416_v0  ;;  %2251 = vmatprep.subr.bf16.mxu1 %v2416_v0 }
  0xa0   :  { %2109 = vmatpush3.bf16.msra.mxu0 %v2548_v53  ;;  %2253 = vmatpush3.bf16.msra.mxu1 %v2548_v53 }
  0xa1   :  { %2110 = vmatprep.subr.bf16.mxu0 %v2416_v0  ;;  %2254 = vmatprep.subr.bf16.mxu1 %v2416_v0 }
  0xa4   :  { %2112 = vmatpush3.bf16.msra.mxu0 %v2550_v54  ;;  %2256 = vmatpush3.bf16.msra.mxu1 %v2550_v54 }
  0xa5   :  { %2113 = vmatprep.subr.bf16.mxu0 %v2416_v0  ;;  %2257 = vmatprep.subr.bf16.mxu1 %v2416_v0 }
  0xa8   :  { %2115 = vmatpush3.bf16.msra.mxu0 %v2552_v55  ;;  %2259 = vmatpush3.bf16.msra.mxu1 %v2552_v55 }
  0xa9   :  { %2116 = vmatprep.subr.bf16.mxu0 %v2416_v0  ;;  %2260 = vmatprep.subr.bf16.mxu1 %v2416_v0 }
  0xab   :  { %1738 = vmatmul.mubr.f32.vlgmr.msra.gmra.mrb[0].mxu0 %v2863_v2  ;;  %1948 = vmatmul.mubr.f32.vlgmr.msra.gmra.mrb[0].mxu1 %v2864_v3 }
  0xac   :  { %2118 = vmatpush3.bf16.msra.mxu0 %v2618_v34  ;;  %2262 = vmatpush3.bf16.msra.mxu1 %v2618_v34 }
  0xad   :  { %2119 = vmatprep.subr.bf16.mxu0 %v2416_v0  ;;  %2263 = vmatprep.subr.bf16.mxu1 %v2416_v0 }
  0xae   :  { %1772 = vmatprep.mubr.msk.f32.mxu0 %vm2417_vm0, %v2418_v1  ;;  %1982 = vmatprep.mubr.msk.f32.mxu1 %vm2417_vm0, %v2418_v1 }
  0xb0   :  { %2121 = vmatpush3.bf16.msra.mxu0 %v2622_v39  ;;  %2265 = vmatpush3.bf16.msra.mxu1 %v2622_v39 }
  0xb1   :  { %2122 = vmatprep.subr.bf16.mxu0 %v2416_v0  ;;  %2266 = vmatprep.subr.bf16.mxu1 %v2416_v0 }
  0xb4   :  { %2124 = vmatpush3.bf16.msra.mxu0 %v2624_v40  ;;  %2268 = vmatpush3.bf16.msra.mxu1 %v2624_v40 }
  0xb5   :  { %2125 = vmatprep.subr.bf16.mxu0 %v2416_v0  ;;  %2269 = vmatprep.subr.bf16.mxu1 %v2416_v0 }
  0xb8   :  { %2127 = vmatpush3.bf16.msra.mxu0 %v2626_v42  ;;  %2271 = vmatpush3.bf16.msra.mxu1 %v2626_v42 }
  0xb9   :  { %2128 = vmatprep.subr.bf16.mxu0 %v2416_v0  ;;  %2272 = vmatprep.subr.bf16.mxu1 %v2416_v0 }
  0xbc   :  { %2130 = vmatpush3.bf16.msra.mxu0 %v2628_v43  ;;  %2274 = vmatpush3.bf16.msra.mxu1 %v2628_v43 }
  0xbd   :  { %2131 = vmatprep.subr.bf16.mxu0 %v2416_v0  ;;  %2275 = vmatprep.subr.bf16.mxu1 %v2416_v0 }
  0xc0   :  { %2133 = vmatpush3.bf16.msra.mxu0 %v2630_v44  ;;  %2277 = vmatpush3.bf16.msra.mxu1 %v2630_v44 }
  0xc1   :  { %2134 = vmatprep.subr.bf16.mxu0 %v2416_v0  ;;  %2278 = vmatprep.subr.bf16.mxu1 %v2416_v0 }
  0xc4   :  { %2136 = vmatpush3.bf16.msra.mxu0 %v2632_v45  ;;  %2280 = vmatpush3.bf16.msra.mxu1 %v2632_v45 }
  0xc5   :  { %2137 = vmatprep.subr.bf16.mxu0 %v2416_v0  ;;  %2281 = vmatprep.subr.bf16.mxu1 %v2416_v0 }
  0xc8   :  { %2139 = vmatpush3.bf16.msra.mxu0 %v2638_v47  ;;  %2283 = vmatpush3.bf16.msra.mxu1 %v2638_v47 }
  0xc9   :  { %2140 = vmatprep.subr.bf16.mxu0 %v2416_v0  ;;  %2284 = vmatprep.subr.bf16.mxu1 %v2416_v0 }
  0xcb   :  { %1773 = vmatmul.mubr.f32.vlgmr.msra.gmra.mrb[0].mxu0 %v2511_v24  ;;  %1983 = vmatmul.mubr.f32.vlgmr.msra.gmra.mrb[0].mxu1 %v2531_v41 }
  0xcc   :  { %2142 = vmatpush3.bf16.msra.mxu0 %v2486_v12  ;;  %2286 = vmatpush3.bf16.msra.mxu1 %v2486_v12 }
  0xcd   :  { %2143 = vmatprep.subr.bf16.mxu0 %v2416_v0  ;;  %2287 = vmatprep.subr.bf16.mxu1 %v2416_v0 }
  0xce   :  { %1807 = vmatprep.mubr.msk.f32.mxu0 %vm2417_vm0, %v2418_v1  ;;  %2017 = vmatprep.mubr.msk.f32.mxu1 %vm2417_vm0, %v2418_v1 }
  0xd0   :  { %2145 = vmatpush3.bf16.msra.mxu0 %v2490_v13  ;;  %2289 = vmatpush3.bf16.msra.mxu1 %v2490_v13 }
  0xd1   :  { %2146 = vmatprep.subr.bf16.mxu0 %v2416_v0  ;;  %2290 = vmatprep.subr.bf16.mxu1 %v2416_v0 }
  0xd4   :  { %2148 = vmatpush3.bf16.msra.mxu0 %v2504_v19  ;;  %2292 = vmatpush3.bf16.msra.mxu1 %v2504_v19 }
  0xd5   :  { %2149 = vmatprep.subr.bf16.mxu0 %v2416_v0  ;;  %2293 = vmatprep.subr.bf16.mxu1 %v2416_v0 }
  0xd8   :  { %2151 = vmatpush3.bf16.msra.mxu0 %v2517_v29  ;;  %2295 = vmatpush3.bf16.msra.mxu1 %v2517_v29 }
  0xd9   :  { %2152 = vmatprep.subr.bf16.mxu0 %v2416_v0  ;;  %2296 = vmatprep.subr.bf16.mxu1 %v2416_v0 }
  0xdc   :  { %2154 = vmatpush3.bf16.msra.mxu0 %v2535_v46  ;;  %2298 = vmatpush3.bf16.msra.mxu1 %v2535_v46 }
  0xdd   :  { %2155 = vmatprep.subr.bf16.mxu0 %v2416_v0  ;;  %2299 = vmatprep.subr.bf16.mxu1 %v2416_v0 }
  0xe0   :  { %2157 = vmatpush3.bf16.msra.mxu0 %v2548_v53  ;;  %2301 = vmatpush3.bf16.msra.mxu1 %v2548_v53 }
  0xe1   :  { %2158 = vmatprep.subr.bf16.mxu0 %v2416_v0  ;;  %2302 = vmatprep.subr.bf16.mxu1 %v2416_v0 }
  0xe4   :  { %2160 = vmatpush3.bf16.msra.mxu0 %v2550_v54  ;;  %2304 = vmatpush3.bf16.msra.mxu1 %v2550_v54 }
  0xe5   :  { %2161 = vmatprep.subr.bf16.mxu0 %v2416_v0  ;;  %2305 = vmatprep.subr.bf16.mxu1 %v2416_v0 }
  0xe8   :  { %2163 = vmatpush3.bf16.msra.mxu0 %v2552_v55  ;;  %2307 = vmatpush3.bf16.msra.mxu1 %v2552_v55 }
  0xeb   :  { %1808 = vmatmul.mubr.f32.vlgmr.msra.gmra.mrb[0].mxu0 %v2511_v24  ;;  %2018 = vmatmul.mubr.f32.vlgmr.msra.gmra.mrb[0].mxu1 %v2531_v41 }
 0x1be   :  { %v698_v1 = vpop.f32.mrb[0].mxu0  ;;  %v1340_v12 = vpop.f32.mrb[0].mxu1 }
 0x1bf   :  { %v1344_v13 = vmul.f32 0.03125, %v698_v1  ;;  %v1809_v19 = vpop.f32.mrb[1].mxu0  ;;  %v2019_v29 = vpop.f32.mrb[1].mxu1 }
 0x1c1   :  { %v1345_v36 = vmul.f32 %v1344_v13, %v698_v1  ;;  %v1359_v41 = vsub.f32 %v2500_v18, %v1344_v13 }
 0x1c3   :  { %v1346_v46 = vsub.f32 %v1340_v12, %v1345_v36 }
 0x1c5   :  { %v1347_v52 = vmul.f32 0.032258064, %v1346_v46 }
 0x1c7   :  { %v1348_v53 = vmax.f32 %v1347_v52, 0.0 }
 0x1c9   :  { %2336 = vrsqrt.f32 %v1348_v53  ;;  %vm1351_vm1 = vcmp.eq.f32.partialorder %v1348_v53, inf  ;;  %v1354_v4 = vand.u32 2147483648, %v1348_v53  ;;  %vm1353_vm2 = vcmp.eq.f32.partialorder %v1348_v53, 0.0 }
 0x1d3   :  { %v2337_v54 = vpop.eup %2336 }
 0x1d4   :  { %v1350_v0 = vmul.f32 %v2337_v54, %v1348_v53 }
 0x1d6   :  { %v1352_v5 = vsel %vm1351_vm1, %v1348_v53, %v1350_v0 }
 0x1d7   :  { %v1355_v55 = vsel %vm1353_vm2, %v1354_v4, %v1352_v5 }
 0x1d8   :  { %v1356_v24 = vadd.f32 1e-06, %v1355_v55 }
 0x1da   :  { %2338 = vrcp.f32 %v1356_v24 }
 0x1e4   :  { %v2339_v6 = vpop.eup %2338 }
 0x1e5   :  { %v1360_v8 = vmul.f32 %v2339_v6, %v1359_v41 }
 0x1e7   :  { %v1368_v11 = vmul.f32 %v1394_v7, %v1360_v8 }
 0x1e9   :  { %v1376_v14 = vadd.f32 %v1395_v10, %v1368_v11 }
 0x1eb   :  { %1377 = vst [vmem:[#allocation7] sm:$0xf] %v1376_v14 }
 0x1ec   :  { %2395 = shalt.err (!%p2392_p6)
}
 0x1ed   :  { %s2396_s21 = scalar_lea.hbm %s2858_s4, 64 }
 0x1ee   :  { %p2397_p7 = scmp.ne.s32.totalorder %s2858_s4, %s2396_s21  ;;  %p2400_p8 = scmp.lt.u32.totalorder %s2396_s21, %s2858_s4 }
 0x1f0   :  { %p2402_p9 = pnand %p2400_p8, %p2397_p7 }
 0x1f2   :  { %2405 = shalt.err (!%p2402_p9)
}
 0x1f3   :  { %1387 = dma.vmem_to_hbm [thread:$0]  %s1385_s18, 64, %s2858_s4, [#allocation4]  }
 0x1f4   :  { %2410 = dma.done.wait [#allocation4], 64  }
 0x1f5   :  { %2411 = vsyncadd [#allocation4], 4294967232 }
 0x1f6   :  { %1391 = vsyncpa [#allocation3], 1 }
 0x1f7   :  { %1392 = vsyncpa [#allocation6], 1 }
 0x1f8   :  { %1393 = vsyncpa [#allocation4], 1 }

</bundles_post_ra>
